<compile_context>
chip_gen: v6e
topology: v6e:2x2x1
jax: 0.10.0
libtpu: 0.0.40
codegen_flags: <defaults>
</compile_context>

<pallas_src>
import functools

import numpy as np
import jax
import jax.numpy as jnp
from jax import lax
from jax.experimental import pallas as pl
from jax.experimental.pallas import tpu as pltpu


def _round_up(x, m):
    return ((x + m - 1) // m) * m


# ----------------------------------------------------------------------------
# Kernel 1: accumulated-cost DP over anti-diagonals (rolling 2-diagonal carry).
# ----------------------------------------------------------------------------
def _dtw_dp_kernel(dskew_ref, cost_ref, p1_ref, p2_ref, *, K, Nr, TK, gamma):
    """dskew_ref block: (TK, L) raw-D anti-diagonals.  cost_ref: (1, 1)."""
    L = dskew_ref.shape[1]
    f32 = jnp.float32
    BIG = f32(1e30)                      # "infinite" cost (finite: no inf math)
    neg_inv_gamma = f32(-1.0 / gamma)
    strip = pl.program_id(0)

    lane = lax.broadcasted_iota(jnp.int32, (1, L), 1)
    is_lane0 = lane == 0
    big_vec = jnp.full((1, L), BIG, f32)

    # Seed once: p1 plays the role of the "virtual" previous diagonal so that
    # cell (0, 0) sees a zero left-neighbor at global step k == 0.
    @pl.when(strip == 0)
    def _():
        p1_ref[...] = jnp.where(is_lane0, f32(0.0), BIG)
        p2_ref[...] = big_vec

    def shifted(v):
        # shifted[i] = v[i-1]; shifted[0] = BIG  (XLU roll + one select)
        return jnp.where(is_lane0, BIG, pltpu.roll(v, shift=1, axis=1))

    def body(kl, carry):
        p1, p2 = carry                               # diag_{k-1}, diag_{k-2}
        gk = strip * TK + kl                         # global diagonal index
        # D'[i, k-i] for this diagonal (sentinel -> ~1e26, acts as +inf).
        d = jnp.exp(dskew_ref[pl.ds(kl, 1), :] * neg_inv_gamma)
        prev = jnp.minimum(jnp.minimum(shifted(p1), p1), shifted(p2))
        new = prev + d                               # diag_k

        # Capture the single scalar the module actually returns.
        @pl.when(gk == K - 1)
        def _():
            cost_ref[...] = new[:, Nr - 1:Nr]

        # After k == 0 the seed must NOT be reused as diag_{-1}; reset it.
        gk_vec = jnp.full((1, L), gk, jnp.int32)
        p2_next = jnp.where(gk_vec == 0, big_vec, p1)
        return new, p2_next

    p1, p2 = lax.fori_loop(0, TK, body, (p1_ref[...], p2_ref[...]), unroll=8)
    p1_ref[...] = p1
    p2_ref[...] = p2


# ----------------------------------------------------------------------------
# Kernel 2: acc_grad shift stencil, tiled over independent row strips.
# ----------------------------------------------------------------------------
def _dtw_grad_kernel(d_ref, d_down_ref, grad_ref, *, gamma):
    f32 = jnp.float32
    neg_inv_gamma = f32(-1.0 / gamma)
    inv_gamma = f32(1.0 / gamma)
    # g = exp(-exp(-D/gamma)/gamma) / gamma ; sentinel rows give exactly g = 0.
    g_here = jnp.exp(jnp.exp(d_ref[...] * neg_inv_gamma) * neg_inv_gamma) * inv_gamma
    g_down = jnp.exp(jnp.exp(d_down_ref[...] * neg_inv_gamma) * neg_inv_gamma) * inv_gamma
    TR = g_here.shape[0]
    zcol = jnp.zeros((TR, 1), f32)
    # Column shifts are once-per-block (not per DP step) -> cheap static slices.
    g_right = jnp.concatenate([g_here[:, 1:], zcol], axis=1)   # g[p, q+1]
    g_diag = jnp.concatenate([g_down[:, 1:], zcol], axis=1)    # g[p+1, q+1]
    grad_ref[...] = g_diag + g_down + g_right - g_here


# ----------------------------------------------------------------------------
# Wrapper
# ----------------------------------------------------------------------------
def soft_dtw(D, gamma=1.0):
    D = jnp.asarray(D, jnp.float32)
    N, M = D.shape
    gamma = float(gamma)
    # exp(-sentinel/gamma) == e^60 ~ 1.1e26: "infinite" DP cost, g == 0 exactly.
    sentinel = jnp.float32(-60.0 * gamma)

    # -------- acc_grad: parallel, pipelined row-strip stencil pass -----------
    TR = 256 if N > 256 else _round_up(N, 8)
    N_pad = _round_up(N, TR)
    D_pad = jnp.full((N_pad + 1, M), sentinel, jnp.float32).at[:N, :].set(D)
    d_top = D_pad[:N_pad, :]              # rows p
    d_down = D_pad[1:N_pad + 1, :]        # rows p+1 (one-row halo, g=0 past N-1)
    grad_pad = pl.pallas_call(
        functools.partial(_dtw_grad_kernel, gamma=gamma),
        out_shape=jax.ShapeDtypeStruct((N_pad, M), jnp.float32),
        grid=(N_pad // TR,),
        in_specs=[pl.BlockSpec((TR, M), lambda s: (s, 0)),
                  pl.BlockSpec((TR, M), lambda s: (s, 0))],
        out_specs=pl.BlockSpec((TR, M), lambda s: (s, 0)),
        compiler_params=pltpu.CompilerParams(
            dimension_semantics=("parallel",)),
    )(d_top, d_down)
    acc_grad = grad_pad[:N, :]

    # -------- acc_cost[N-1, M-1]: rolling anti-diagonal wavefront DP ---------
    # Put the smaller dimension on lanes (cost is transpose-invariant).
    Dm = D if N <= M else D.T
    Nr, Mr = Dm.shape
    K = Nr + Mr - 1                       # number of anti-diagonals
    L = _round_up(Nr, 128)                # lane-dense diagonal vectors
    TK = 256 if K > 256 else _round_up(K, 8)
    K_pad = _round_up(K, TK)

    # Skewed layout (layout plumbing only): D_skew[k, i] = Dm[i, k - i].
    kk = jnp.arange(K_pad, dtype=jnp.int32)[:, None]      # (K_pad, 1)
    ii = jnp.arange(L, dtype=jnp.int32)[None, :]          # (1, L)
    jj = kk - ii
    valid = (ii < Nr) & (jj >= 0) & (jj < Mr)
    gathered = Dm[jnp.clip(ii, 0, Nr - 1), jnp.clip(jj, 0, Mr - 1)]
    d_skew = jnp.where(valid, gathered, sentinel)          # (K_pad, L)

    cost11 = pl.pallas_call(
        functools.partial(_dtw_dp_kernel, K=K, Nr=Nr, TK=TK, gamma=gamma),
        out_shape=jax.ShapeDtypeStruct((1, 1), jnp.float32),
        grid=(K_pad // TK,),
        in_specs=[pl.BlockSpec((TK, L), lambda s: (s, 0))],
        out_specs=pl.BlockSpec((1, 1), lambda s: (0, 0)),
        scratch_shapes=[pltpu.VMEM((1, L), jnp.float32),   # diag_{k-1}
                        pltpu.VMEM((1, L), jnp.float32)],  # diag_{k-2}
        compiler_params=pltpu.CompilerParams(
            dimension_semantics=("arbitrary",)),
    )(d_skew)

    return cost11[0, 0], acc_grad


# ----------------------------------------------------------------------------
# Literal numpy port of the PyTorch forward, for verification.
# ----------------------------------------------------------------------------
def _reference(D, gamma=1.0):
    D = np.exp(-np.asarray(D, np.float32) / gamma)
    N, M = D.shape
    cost = np.zeros((N, M), np.float32)
    grad = np.zeros((N, M), np.float32)
    for i in range(N):
        for j in range(M):
            if i > 0 and j > 0:
                cost[i, j] = min(cost[i - 1, j], cost[i, j - 1],
                                 cost[i - 1, j - 1]) + D[i, j]
            elif i > 0:
                cost[i, j] = cost[i - 1, j] + D[i, j]
            elif j > 0:
                cost[i, j] = cost[i, j - 1] + D[i, j]
            else:
                cost[i, j] = D[i, j]
            d = np.exp(-D[i, j] / gamma)
            if i > 0 and j > 0:
                grad[i - 1, j - 1] += (grad[i, j] + d) / gamma
            if i > 0:
                grad[i - 1, j] += (grad[i, j] + d) / gamma
            if j > 0:
                grad[i, j - 1] += (grad[i, j] + d) / gamma
            grad[i, j] -= (grad[i, j] + d) / gamma
    return cost[N - 1, M - 1], grad


if __name__ == "__main__":
    key = jax.random.PRNGKey(0)
    k1, k2 = jax.random.split(key)

    # Square case (the module's typical use).
    N, M = 16, 16
    D = jax.random.uniform(k1, (N, M), jnp.float32, minval=0.0, maxval=4.0)
    cost, grad = soft_dtw(D, gamma=1.0)
    cost = jax.block_until_ready(cost)
    grad = jax.block_until_ready(grad)
    ref_cost, ref_grad = _reference(np.asarray(D), gamma=1.0)
    assert np.allclose(float(cost), ref_cost, rtol=1e-4, atol=1e-4)
    assert np.allclose(np.asarray(grad), ref_grad, rtol=1e-4, atol=1e-4)

    # Rectangular case (exercises the transpose / padding paths).
    N2, M2 = 24, 12
    D2 = jax.random.uniform(k2, (N2, M2), jnp.float32, minval=0.0, maxval=4.0)
    cost2, grad2 = soft_dtw(D2, gamma=0.5)
    cost2 = jax.block_until_ready(cost2)
    grad2 = jax.block_until_ready(grad2)
    ref_cost2, ref_grad2 = _reference(np.asarray(D2), gamma=0.5)
    assert np.allclose(float(cost2), ref_cost2, rtol=1e-4, atol=1e-4)
    assert np.allclose(np.asarray(grad2), ref_grad2, rtol=1e-4, atol=1e-4)

    print("KERNEL_OK")
</pallas_src>

<mosaic_0001>
module attributes {stable_mosaic.version = 11 : i64} {
  func.func @_dtw_grad_kernel(%arg0: i32, %arg1: memref<16x16xf32, #tpu.memory_space<vmem>>, %arg2: memref<16x16xf32, #tpu.memory_space<vmem>>, %arg3: memref<16x16xf32, #tpu.memory_space<vmem>>) attributes {dimension_semantics = [#tpu.dimension_semantics<parallel>], iteration_bounds = array<i64: 1>, scalar_prefetch = 0 : i64, scratch_operands = 0 : i64, tpu.core_type = #tpu.core_type<tc>, window_params = [{transform_indices = @transform_0, window_bounds = array<i64: 16, 16>}, {transform_indices = @transform_1, window_bounds = array<i64: 16, 16>}, {transform_indices = @transform_2, window_bounds = array<i64: 16, 16>}]} {
    %c0 = arith.constant 0 : index
    %c0_0 = arith.constant 0 : index
    %0 = vector.load %arg1[%c0, %c0_0] : memref<16x16xf32, #tpu.memory_space<vmem>>, vector<16x16xf32>
    %cst = arith.constant -1.000000e+00 : f32
    %1 = vector.broadcast %cst : f32 to vector<16x16xf32>
    %2 = arith.mulf %0, %1 : vector<16x16xf32>
    %3 = math.exp %2 : vector<16x16xf32>
    %cst_1 = arith.constant -1.000000e+00 : f32
    %4 = vector.broadcast %cst_1 : f32 to vector<16x16xf32>
    %5 = arith.mulf %3, %4 : vector<16x16xf32>
    %6 = math.exp %5 : vector<16x16xf32>
    %cst_2 = arith.constant 1.000000e+00 : f32
    %7 = vector.broadcast %cst_2 : f32 to vector<16x16xf32>
    %8 = arith.mulf %6, %7 : vector<16x16xf32>
    %c0_3 = arith.constant 0 : index
    %c0_4 = arith.constant 0 : index
    %9 = vector.load %arg2[%c0_3, %c0_4] : memref<16x16xf32, #tpu.memory_space<vmem>>, vector<16x16xf32>
    %cst_5 = arith.constant -1.000000e+00 : f32
    %10 = vector.broadcast %cst_5 : f32 to vector<16x16xf32>
    %11 = arith.mulf %9, %10 : vector<16x16xf32>
    %12 = math.exp %11 : vector<16x16xf32>
    %cst_6 = arith.constant -1.000000e+00 : f32
    %13 = vector.broadcast %cst_6 : f32 to vector<16x16xf32>
    %14 = arith.mulf %12, %13 : vector<16x16xf32>
    %15 = math.exp %14 : vector<16x16xf32>
    %cst_7 = arith.constant 1.000000e+00 : f32
    %16 = vector.broadcast %cst_7 : f32 to vector<16x16xf32>
    %17 = arith.mulf %15, %16 : vector<16x16xf32>
    %cst_8 = arith.constant 0.000000e+00 : f32
    %18 = vector.broadcast %cst_8 : f32 to vector<16x1xf32>
    %19 = vector.extract_strided_slice %8 {offsets = [0, 1], sizes = [16, 15], strides = [1, 1]} : vector<16x16xf32> to vector<16x15xf32>
    %20 = tpu.concatenate %19, %18 in 1 : vector<16x15xf32>, vector<16x1xf32> -> vector<16x16xf32>
    %21 = vector.extract_strided_slice %17 {offsets = [0, 1], sizes = [16, 15], strides = [1, 1]} : vector<16x16xf32> to vector<16x15xf32>
    %22 = tpu.concatenate %21, %18 in 1 : vector<16x15xf32>, vector<16x1xf32> -> vector<16x16xf32>
    %23 = arith.addf %22, %17 : vector<16x16xf32>
    %24 = arith.addf %23, %20 : vector<16x16xf32>
    %25 = arith.subf %24, %8 : vector<16x16xf32>
    %c0_9 = arith.constant 0 : index
    %c0_10 = arith.constant 0 : index
    %26 = vector.load %arg3[%c0_9, %c0_10] : memref<16x16xf32, #tpu.memory_space<vmem>>, vector<16x16xf32>
    tpu.vector_store %arg3[%c0_9, %c0_10], %25 {strides = array<i32>} : memref<16x16xf32, #tpu.memory_space<vmem>>, vector<16x16xf32>,
    return
  }
  func.func @transform_0(%arg0: i32) -> (i32, i32) {
    %c0_i32 = arith.constant 0 : i32
    %c0_i32_0 = arith.constant 0 : i32
    return %arg0, %c0_i32 : i32, i32
  }
  func.func @transform_1(%arg0: i32) -> (i32, i32) {
    %c0_i32 = arith.constant 0 : i32
    %c0_i32_0 = arith.constant 0 : i32
    return %arg0, %c0_i32 : i32, i32
  }
  func.func @transform_2(%arg0: i32) -> (i32, i32) {
    %c0_i32 = arith.constant 0 : i32
    %c0_i32_0 = arith.constant 0 : i32
    return %arg0, %c0_i32 : i32, i32
  }
}

</mosaic_0001>

<bundles_post_ra>
// kernel: tpu_custom_call.1
= control target key start
LH: loop header
LB: loop body
LE: loop exit
PB: predicated region body
PF: predicated region fallthrough
CT: control target
= control target key end

     0   :  { %7 = vsyncpa [#allocation3], 0  ;;  %s243_s0 = inlined_call_operand.hbm [shape: f32[16,16], index: 0, kind: input, shape index: {}]   ;;  %s244_s1 = inlined_call_operand.hbm [shape: f32[16,16], index: 1, kind: input, shape index: {}]   ;;  %s245_s2 = inlined_call_operand.hbm [shape: f32[16,16], index: 2, kind: output, shape index: {}]  }
   0x1   :  { %8 = vsyncpa [#allocation6], 0 }
   0x2   :  { %9 = vsyncpa [#allocation4], 0  ;;  %s204_s9 = smov [#allocation2]  }
   0x3   :  { %s15_s10 = sshll.u32 %s204_s9, 4  ;;  %s16_s10 = int_to_ptr.vmem [resolvable:$true] %s15_s10 }
   0x4   :  { %s146_s11 = scalar_lea.vmem %s16_s10, 256  ;;  %p151_p1 = scmp.lt.s32.totalorder %s16_s10, %s16_s10 }
   0x5   :  { %p147_p0 = scmp.ne.s32.totalorder %s16_s10, %s146_s11  ;;  %p152_p2 = scmp.lt.s32.totalorder %s146_s11, %s146_s11 }
   0x7   :  { %p153_p3 = por %p152_p2, %p151_p1 }
   0x9   :  { %p154_p4 = pnand %p153_p3, %p147_p0 }
   0xb   :  { %157 = shalt.err (!%p154_p4)
}
   0xc   :  { %s205_s12 = smov 128   ;;  %s206_s13 = smov 8  }
   0xd   :  { %21 = dma.hbm_to_vmem [thread:$0]  %s243_s0, 256, %s16_s10, [#allocation3], %s205_s12, %s205_s12, %s206_s13  }
   0xe   :  { %s207_s16 = smov [#allocation5]  }
   0xf   :  { %s27_s17 = sshll.u32 %s207_s16, 4  ;;  %s28_s17 = int_to_ptr.vmem [resolvable:$true] %s27_s17 }
  0x10   :  { %s166_s18 = scalar_lea.vmem %s28_s17, 256  ;;  %p171_p6 = scmp.lt.s32.totalorder %s28_s17, %s28_s17 }
  0x11   :  { %p167_p5 = scmp.ne.s32.totalorder %s28_s17, %s166_s18  ;;  %p172_p7 = scmp.lt.s32.totalorder %s166_s18, %s166_s18 }
  0x13   :  { %p173_p8 = por %p172_p7, %p171_p6 }
  0x15   :  { %p174_p9 = pnand %p173_p8, %p167_p5 }
  0x17   :  { %177 = shalt.err (!%p174_p9)
}
  0x18   :  { %33 = dma.hbm_to_vmem [thread:$0]  %s244_s1, 256, %s28_s17, [#allocation6], %s205_s12, %s205_s12, %s206_s13  }
  0x19   :  { %198 = dma.done.wait [#allocation3], 256  }
  0x1a   :  { %199 = vsyncadd [#allocation3], 4294967040 }
  0x1b   :  { %200 = dma.done.wait [#allocation6], 256  }
  0x1c   :  { %201 = vsyncadd [#allocation6], 4294967040  ;;  %v54_v0 = vld [vmem:[#allocation5] sm:$0xff]  ;;  %v40_v1 = vld [vmem:[#allocation2] sm:$0xff]  ;;  %s208_s0 = smov 127   ;;  %vm76_vm0 = vcmask 121856  }
  0x1d   :  { %v55_v2 = vld [vmem:[#allocation5 + $0x8] sm:$0xff]  ;;  %v56_v3 = vmul.f32 -1.0, %v54_v0  ;;  %v42_v4 = vmul.f32 -1.0, %v40_v1  ;;  %v41_v6 = vld [vmem:[#allocation2 + $0x8] sm:$0xff]  ;;  %vm95_vm1 = vcmask 130048   ;;  %s209_s1 = smov [#allocation7]  }
  0x1e   :  { %v57_v5 = vmul.f32 -1.0, %v55_v2  ;;  %v43_v7 = vmul.f32 -1.0, %v41_v6  ;;  %s103_s21 = sshll.u32 %s209_s1, 4  ;;  %s104_s21 = int_to_ptr.vmem [resolvable:$true] %s103_s21 }
  0x1f   :  { %v58_v8 = vmul.f32 1.442695, %v56_v3  ;;  %v44_v9 = vmul.f32 1.442695, %v42_v4  ;;  %s178_s22 = scalar_lea.vmem %s104_s21, 256  ;;  %p183_p11 = scmp.lt.s32.totalorder %s104_s21, %s104_s21 }
  0x20   :  { %v60_v10 = vmul.f32 1.442695, %v57_v5  ;;  %v46_v11 = vmul.f32 1.442695, %v43_v7  ;;  %p179_p10 = scmp.ne.s32.totalorder %s104_s21, %s178_s22  ;;  %p184_p12 = scmp.lt.s32.totalorder %s178_s22, %s178_s22 }
  0x21   :  { %122 = vpow2.f32 %v58_v8 }
  0x22   :  { %124 = vpow2.f32 %v44_v9  ;;  %p185_p13 = por %p184_p12, %p183_p11 }
  0x23   :  { %126 = vpow2.f32 %v60_v10 }
  0x24   :  { %128 = vpow2.f32 %v46_v11  ;;  %p186_p0 = pnand %p185_p13, %p179_p10 }
  0x2e   :  { %v123_v12 = vpop.eup %122 }
  0x2f   :  { %v125_v13 = vpop.eup %124  ;;  %v62_v14 = vmul.f32 -1.0, %v123_v12 }
  0x30   :  { %v127_v15 = vpop.eup %126  ;;  %v48_v16 = vmul.f32 -1.0, %v125_v13 }
  0x31   :  { %v129_v17 = vpop.eup %128  ;;  %v64_v18 = vmul.f32 1.442695, %v62_v14  ;;  %v63_v19 = vmul.f32 -1.0, %v127_v15 }
  0x32   :  { %v50_v20 = vmul.f32 1.442695, %v48_v16  ;;  %v49_v21 = vmul.f32 -1.0, %v129_v17 }
  0x33   :  { %130 = vpow2.f32 %v64_v18  ;;  %v66_v22 = vmul.f32 1.442695, %v63_v19 }
  0x34   :  { %132 = vpow2.f32 %v50_v20  ;;  %v52_v23 = vmul.f32 1.442695, %v49_v21 }
  0x35   :  { %134 = vpow2.f32 %v66_v22 }
  0x36   :  { %136 = vpow2.f32 %v52_v23 }
  0x40   :  { %v131_v24 = vpop.eup %130 }
  0x41   :  { %v133_v25 = vpop.eup %132  ;;  %81 = vrot.lane.b32.xlu0 %v131_v24, %s208_s0 }
  0x42   :  { %v135_v26 = vpop.eup %134  ;;  %70 = vrot.lane.b32.xlu1 %v133_v25, %s208_s0 }
  0x43   :  { %v137_v27 = vpop.eup %136 }
  0x45   :  { %83 = vrot.lane.b32.xlu0 %v135_v26, %s208_s0 }
  0x46   :  { %72 = vrot.lane.b32.xlu1 %v137_v27, %s208_s0 }
  0xb3   :  { %v82_v28 = vpop.permute.xlu0 %81 }
  0xb4   :  { %v87_v29 = vsel %vm76_vm0, %v82_v28, 0.0  ;;  %v71_v30 = vpop.permute.xlu1 %70 }
  0xb5   :  { %v89_v31 = vadd.f32 %v131_v24, %v87_v29  ;;  %v77_v32 = vsel %vm76_vm0, %v71_v30, 0.0 }
  0xb7   :  { %v91_v33 = vadd.f32 %v89_v31, %v77_v32  ;;  %v84_v34 = vpop.permute.xlu0 %83 }
  0xb8   :  { %v88_v35 = vsel %vm76_vm0, %v84_v34, 0.0  ;;  %v73_v36 = vpop.permute.xlu1 %72 }
  0xb9   :  { %v93_v37 = vsub.f32 %v91_v33, %v133_v25  ;;  %v90_v38 = vadd.f32 %v135_v26, %v88_v35  ;;  %v78_v39 = vsel %vm76_vm0, %v73_v36, 0.0 }
  0xbb   :  { %v92_v40 = vadd.f32 %v90_v38, %v78_v39  ;;  %96 = vst.msk [vmem:[#allocation7] sm:$0xff] %vm95_vm1, %v93_v37 }
  0xbd   :  { %v94_v41 = vsub.f32 %v92_v40, %v137_v27 }
  0xbf   :  { %97 = vst.msk [vmem:[#allocation7 + $0x8] sm:$0xff] %vm95_vm1, %v94_v41 }
  0xc0   :  { %189 = shalt.err (!%p186_p0)
}
  0xc1   :  { %109 = dma.vmem_to_hbm [thread:$0]  %s104_s21, 256, %s245_s2, [#allocation4], %s205_s12, %s205_s12, %s206_s13  }
  0xc2   :  { %202 = dma.done.wait [#allocation4], 256  }
  0xc3   :  { %203 = vsyncadd [#allocation4], 4294967040 }
  0xc4   :  { %113 = vsyncpa [#allocation3], 1 }
  0xc5   :  { %114 = vsyncpa [#allocation6], 1 }
  0xc6   :  { %115 = vsyncpa [#allocation4], 1 }

</bundles_post_ra>
